<compile_context>
chip_gen: v7x
topology: tpu7x:2x2x1
jax: 0.10.0
libtpu: 0.0.40
codegen_flags: <defaults>
</compile_context>

<pallas_src>
import functools

import jax
import jax.numpy as jnp
from jax.experimental import pallas as pl
from jax.experimental.pallas import tpu as pltpu


def _round_up(x, m):
    return ((x + m - 1) // m) * m


# ----------------------------- fused Pallas kernel -----------------------------

def _decocer_fwd_kernel(x_ref, prew_ref, preb_ref, convw_ref, convb_ref,
                        melw_ref, melb_ref, o_ref, pad_ref, *,
                        k_size, dilations, pad_rows, act_slope):
    """Fused Decocer forward over the whole batch (single grid step).

    x_ref    : (B, T, idim)       channels-last input slab
    prew_ref : (idim, H) bf16     preb_ref: (1, H) f32
    convw_ref: (L*K, H, H) bf16   tap-major: convw_ref[l*K + k] is (in_ch, out_ch)
    convb_ref: (L, 1, H) f32
    melw_ref : (H, n_mels_pad) bf16, melb_ref: (1, n_mels_pad) f32
    o_ref    : (B, T, n_mels_pad) f32
    pad_ref  : VMEM (B, T + 2*pad_rows, H) f32  zero-bordered time buffer
    """
    B, T, idim = x_ref.shape
    H = preb_ref.shape[1]
    BT = B * T
    K = k_size

    def mm(a, b):
        # bf16 operands (weights already bf16), f32 accumulation on the MXU.
        return jnp.dot(a.astype(jnp.bfloat16), b,
                       preferred_element_type=jnp.float32)

    # ---- pre_linear over all B*T rows at once: (B*T, idim) @ (idim, H) ----
    x = x_ref[...].reshape(BT, idim)
    h = mm(x, prew_ref[...]) + preb_ref[...]                       # (BT, H) f32

    # ---- zero ONLY the pad border rows (center is fully overwritten per layer) ----
    # INVARIANT: nothing below may write into rows [0, pad_rows) or
    # [pad_rows+T, pad_rows+T+pad_rows), or 'same' zero-padding breaks.
    if pad_rows:
        zeros = jnp.zeros((B, pad_rows, H), pad_ref.dtype)
        pad_ref[:, :pad_rows, :] = zeros
        pad_ref[:, pad_rows + T:pad_rows + T + pad_rows, :] = zeros

    # ---- residual dilated conv stack (ResConvBlock, eval mode) ----
    # TODO(synk): ResConvBlock internals are not in the spec; implemented as
    #   x = x + Dropout(Act(Conv1d(x, k_size, dilation, padding='same'))) per layer,
    #   with dropout = identity (eval) and weight_norm folded into the weights.
    # TODO(synk): at production depth replace this static unroll with lax.fori_loop
    #   (dynamic convw_ref[l] indexing, dilation offsets from an SMEM table) to
    #   bound live ranges / code size.
    for l, d in enumerate(dilations):                              # static unroll
        pad_ref[:, pad_rows:pad_rows + T, :] = h.reshape(B, T, H)  # aligned center write
        base = pad_rows - d * (K - 1) // 2
        y = convb_ref[l]                                           # (1, H) f32
        for k in range(K):                                         # static unroll
            s = base + k * d
            tap = pad_ref[:, s:s + T, :].reshape(BT, H)            # shifted window
            y = y + mm(tap, convw_ref[l * K + k])                  # (BT, H) f32
        y = jnp.where(y > 0, y, act_slope * y)                     # LeakyReLU / ReLU
        h = h + y                                                  # residual add

    # ---- mel_output_layer (lane-padded): (B*T, H) @ (H, n_mels_pad) ----
    out = mm(h, melw_ref[...]) + melb_ref[...]
    o_ref[...] = out.reshape(B, T, melb_ref.shape[1])


def decocer_forward(params, text_value_expanded, *, k_size, dilations, act_slope):
    """text_value_expanded: (B, idim, T) channels-first, as in the PyTorch forward."""
    B, idim, T = text_value_expanded.shape
    H = params['pre_w'].shape[1]
    n_mels = params['mel_w'].shape[1]
    L, K = params['conv_w'].shape[:2]
    if dilations is None:
        dilations = [1] * L
    dilations = tuple(int(d) for d in dilations)
    assert len(dilations) == L, "len(dilations) must equal n_decoder_layer"
    assert K == k_size, "k_size mismatch with conv weights"

    max_pad = max(d * (k_size - 1) // 2 for d in dilations)
    pad_rows = _round_up(max(max_pad, 1), 8)        # sublane-aligned center write
    n_mels_p = _round_up(n_mels, 128)               # lane-dense output slab

    # Wrapper-side layout plumbing / dtype prep only (no compute hoisted):
    # channels-last activations, bf16 weights, lane-padded mel head.
    x = jnp.transpose(text_value_expanded, (0, 2, 1)).astype(jnp.float32)  # (B,T,idim)
    pre_w = params['pre_w'].astype(jnp.bfloat16)
    pre_b = params['pre_b'].astype(jnp.float32)
    conv_w = params['conv_w'].reshape(L * K, H, H).astype(jnp.bfloat16)
    conv_b = params['conv_b'].astype(jnp.float32)
    mel_w = jnp.pad(params['mel_w'].astype(jnp.bfloat16),
                    ((0, 0), (0, n_mels_p - n_mels)))
    mel_b = jnp.pad(params['mel_b'].astype(jnp.float32),
                    ((0, 0), (0, n_mels_p - n_mels)))

    kern = functools.partial(_decocer_fwd_kernel, k_size=k_size,
                             dilations=dilations, pad_rows=pad_rows,
                             act_slope=float(act_slope))

    out = pl.pallas_call(
        kern,
        out_shape=jax.ShapeDtypeStruct((B, T, n_mels_p), jnp.float32),
        grid=(1,),
        in_specs=[
            pl.BlockSpec((B, T, idim), lambda i: (0, 0, 0)),
            pl.BlockSpec((idim, H), lambda i: (0, 0)),
            pl.BlockSpec((1, H), lambda i: (0, 0)),
            pl.BlockSpec((L * K, H, H), lambda i: (0, 0, 0)),
            pl.BlockSpec((L, 1, H), lambda i: (0, 0, 0)),
            pl.BlockSpec((H, n_mels_p), lambda i: (0, 0)),
            pl.BlockSpec((1, n_mels_p), lambda i: (0, 0)),
        ],
        out_specs=pl.BlockSpec((B, T, n_mels_p), lambda i: (0, 0, 0)),
        scratch_shapes=[
            pltpu.VMEM((B, T + 2 * pad_rows, H), jnp.float32),  # zero-bordered buffer
        ],
        compiler_params=pltpu.CompilerParams(
            dimension_semantics=("arbitrary",)),
    )(x, pre_w, pre_b, conv_w, conv_b, mel_w, mel_b)

    return out[:, :, :n_mels]


# ----------------------------- parameters & reference -----------------------------

def init_params(key, *, idim, encoder_hidden, n_decoder_layer, k_size, n_mels):
    scale = 0.02

    def nrm(k, shape):
        return scale * jax.random.normal(k, shape, dtype=jnp.float32)

    keys = jax.random.split(key, 6)
    H = encoder_hidden
    return {
        'pre_w': nrm(keys[0], (idim, H)),
        'pre_b': nrm(keys[1], (1, H)),
        # Conv weights stored tap-major: conv_w[l, k, in_ch, out_ch].
        'conv_w': nrm(keys[2], (n_decoder_layer, k_size, H, H)),
        'conv_b': nrm(keys[3], (n_decoder_layer, 1, H)),
        'mel_w': nrm(keys[4], (H, n_mels)),
        'mel_b': nrm(keys[5], (1, n_mels)),
    }


def decocer_reference(params, text_value_expanded, *, k_size, dilations, act_slope):
    """Pure-JAX reference (f32) of the same forward pass."""
    x = jnp.transpose(text_value_expanded, (0, 2, 1)).astype(jnp.float32)
    h = x @ params['pre_w'] + params['pre_b']
    B, T, H = h.shape
    K = k_size
    for l, d in enumerate(dilations):
        pad = d * (K - 1) // 2
        hp = jnp.pad(h, ((0, 0), (pad, pad), (0, 0)))
        y = sum(hp[:, k * d:k * d + T, :] @ params['conv_w'][l, k]
                for k in range(K)) + params['conv_b'][l]
        y = jnp.where(y > 0, y, act_slope * y)
        h = h + y
    return h @ params['mel_w'] + params['mel_b']


# ----------------------------- main -----------------------------

if __name__ == "__main__":
    IDIM = 64             # channel dim of text_value_expanded
    ENC_HIDDEN = 32       # encoder_hidden
    N_DEC_LAYERS = 3      # n_decoder_layer
    K_SIZE = 5            # k_size (odd -> 'same' padding)
    DILATIONS = [1, 2, 4]
    ACT_SLOPE = 0.2       # LeakyReLU(negative_slope=0.2); dropout is identity (eval)
    N_MELS = 80
    B, T = 2, 16

    root = jax.random.PRNGKey(0)
    k_par, k_in = jax.random.split(root)

    params = init_params(k_par, idim=IDIM, encoder_hidden=ENC_HIDDEN,
                         n_decoder_layer=N_DEC_LAYERS, k_size=K_SIZE, n_mels=N_MELS)

    # PyTorch forward takes (B, idim, T) and transposes internally.
    text_value_expanded = jax.random.normal(k_in, (B, IDIM, T), dtype=jnp.float32)

    fwd = jax.jit(functools.partial(decocer_forward, k_size=K_SIZE,
                                    dilations=DILATIONS, act_slope=ACT_SLOPE))
    mel_pred = fwd(params, text_value_expanded)
    jax.block_until_ready(mel_pred)

    assert mel_pred.shape == (B, T, N_MELS)
    assert bool(jnp.all(jnp.isfinite(mel_pred)))

    ref = decocer_reference(params, text_value_expanded, k_size=K_SIZE,
                            dilations=DILATIONS, act_slope=ACT_SLOPE)
    max_err = float(jnp.max(jnp.abs(mel_pred - ref)))
    assert max_err < 5e-3, f"kernel/reference mismatch: max abs err = {max_err}"

    print("KERNEL_OK")
</pallas_src>

<mosaic_0001>
module attributes {stable_mosaic.version = 11 : i64} {
  func.func @_decocer_fwd_kernel(%arg0: i32, %arg1: memref<2x16x64xf32, #tpu.memory_space<vmem>>, %arg2: memref<64x32xbf16, #tpu.memory_space<vmem>>, %arg3: memref<1x32xf32, #tpu.memory_space<vmem>>, %arg4: memref<15x32x32xbf16, #tpu.memory_space<vmem>>, %arg5: memref<3x1x32xf32, #tpu.memory_space<vmem>>, %arg6: memref<32x128xbf16, #tpu.memory_space<vmem>>, %arg7: memref<1x128xf32, #tpu.memory_space<vmem>>, %arg8: memref<2x16x128xf32, #tpu.memory_space<vmem>>, %arg9: memref<2x32x32xf32, #tpu.memory_space<vmem>>) attributes {dimension_semantics = [#tpu.dimension_semantics<arbitrary>], iteration_bounds = array<i64: 1>, scalar_prefetch = 0 : i64, scratch_operands = 1 : i64, tpu.core_type = #tpu.core_type<tc>, window_params = [{pipeline_mode = #tpu.pipeline_mode<synchronous>, transform_indices = @transform_0, window_bounds = array<i64: 2, 16, 64>}, {pipeline_mode = #tpu.pipeline_mode<synchronous>, transform_indices = @transform_1, window_bounds = array<i64: 64, 32>}, {pipeline_mode = #tpu.pipeline_mode<synchronous>, transform_indices = @transform_2, window_bounds = array<i64: 1, 32>}, {pipeline_mode = #tpu.pipeline_mode<synchronous>, transform_indices = @transform_3, window_bounds = array<i64: 15, 32, 32>}, {pipeline_mode = #tpu.pipeline_mode<synchronous>, transform_indices = @transform_4, window_bounds = array<i64: 3, 1, 32>}, {pipeline_mode = #tpu.pipeline_mode<synchronous>, transform_indices = @transform_5, window_bounds = array<i64: 32, 128>}, {pipeline_mode = #tpu.pipeline_mode<synchronous>, transform_indices = @transform_6, window_bounds = array<i64: 1, 128>}, {pipeline_mode = #tpu.pipeline_mode<synchronous>, transform_indices = @transform_7, window_bounds = array<i64: 2, 16, 128>}]} {
    %c0 = arith.constant 0 : index
    %c0_0 = arith.constant 0 : index
    %c0_1 = arith.constant 0 : index
    %0 = vector.load %arg1[%c0, %c0_0, %c0_1] : memref<2x16x64xf32, #tpu.memory_space<vmem>>, vector<2x16x64xf32>
    %1 = vector.shape_cast %0 : vector<2x16x64xf32> to vector<32x64xf32>
    %c0_2 = arith.constant 0 : index
    %c0_3 = arith.constant 0 : index
    %2 = vector.load %arg2[%c0_2, %c0_3] : memref<64x32xbf16, #tpu.memory_space<vmem>>, vector<64x32xbf16>
    %3 = arith.truncf %1 : vector<32x64xf32> to vector<32x64xbf16>
    %cst = arith.constant dense<0.000000e+00> : vector<32x32xf32>
    %4 = tpu.matmul %3, %2, %cst {dimension_numbers = #tpu.dot_dimension_numbers<[1], [0], [0], [1], [0, 0, 1, 1], [], []>} : vector<32x64xbf16>, vector<64x32xbf16>, vector<32x32xf32> -> vector<32x32xf32>
    %c0_4 = arith.constant 0 : index
    %c0_5 = arith.constant 0 : index
    %5 = vector.load %arg3[%c0_4, %c0_5] : memref<1x32xf32, #tpu.memory_space<vmem>>, vector<1x32xf32>
    %6 = vector.broadcast %5 : vector<1x32xf32> to vector<32x32xf32>
    %7 = arith.addf %4, %6 : vector<32x32xf32>
    %cst_6 = arith.constant 0.000000e+00 : f32
    %8 = vector.broadcast %cst_6 : f32 to vector<2x8x32xf32>
    %c0_7 = arith.constant 0 : index
    %c0_8 = arith.constant 0 : index
    %c0_9 = arith.constant 0 : index
    %9 = vector.load %arg9[%c0_7, %c0_8, %c0_9] : memref<2x32x32xf32, #tpu.memory_space<vmem>>, vector<2x8x32xf32>
    tpu.vector_store %arg9[%c0_7, %c0_8, %c0_9], %8 {strides = array<i32>} : memref<2x32x32xf32, #tpu.memory_space<vmem>>, vector<2x8x32xf32>,
    %c0_10 = arith.constant 0 : index
    %c24 = arith.constant 24 : index
    %c0_11 = arith.constant 0 : index
    %10 = vector.load %arg9[%c0_10, %c24, %c0_11] : memref<2x32x32xf32, #tpu.memory_space<vmem>>, vector<2x8x32xf32>
    tpu.vector_store %arg9[%c0_10, %c24, %c0_11], %8 {strides = array<i32>} : memref<2x32x32xf32, #tpu.memory_space<vmem>>, vector<2x8x32xf32>,
    %11 = vector.shape_cast %7 : vector<32x32xf32> to vector<2x16x32xf32>
    %c0_12 = arith.constant 0 : index
    %c8 = arith.constant 8 : index
    %c0_13 = arith.constant 0 : index
    %12 = vector.load %arg9[%c0_12, %c8, %c0_13] : memref<2x32x32xf32, #tpu.memory_space<vmem>>, vector<2x16x32xf32>
    tpu.vector_store %arg9[%c0_12, %c8, %c0_13], %11 {strides = array<i32>} : memref<2x32x32xf32, #tpu.memory_space<vmem>>, vector<2x16x32xf32>,
    %c0_14 = arith.constant 0 : index
    %c0_15 = arith.constant 0 : index
    %c0_16 = arith.constant 0 : index
    %13 = vector.load %arg5[%c0_14, %c0_15, %c0_16] : memref<3x1x32xf32, #tpu.memory_space<vmem>>, vector<1x1x32xf32>
    %14 = vector.shape_cast %13 : vector<1x1x32xf32> to vector<1x32xf32>
    %c0_17 = arith.constant 0 : index
    %c6 = arith.constant 6 : index
    %c0_18 = arith.constant 0 : index
    %15 = vector.load %arg9[%c0_17, %c6, %c0_18] : memref<2x32x32xf32, #tpu.memory_space<vmem>>, vector<2x16x32xf32>
    %16 = vector.shape_cast %15 : vector<2x16x32xf32> to vector<32x32xf32>
    %c0_19 = arith.constant 0 : index
    %c0_20 = arith.constant 0 : index
    %c0_21 = arith.constant 0 : index
    %17 = vector.load %arg4[%c0_19, %c0_20, %c0_21] : memref<15x32x32xbf16, #tpu.memory_space<vmem>>, vector<1x32x32xbf16>
    %18 = vector.shape_cast %17 : vector<1x32x32xbf16> to vector<32x32xbf16>
    %19 = arith.truncf %16 : vector<32x32xf32> to vector<32x32xbf16>
    %cst_22 = arith.constant dense<0.000000e+00> : vector<32x32xf32>
    %20 = tpu.matmul %19, %18, %cst_22 {dimension_numbers = #tpu.dot_dimension_numbers<[1], [0], [0], [1], [0, 0, 1, 1], [], []>} : vector<32x32xbf16>, vector<32x32xbf16>, vector<32x32xf32> -> vector<32x32xf32>
    %21 = vector.broadcast %14 : vector<1x32xf32> to vector<32x32xf32>
    %22 = arith.addf %21, %20 : vector<32x32xf32>
    %c0_23 = arith.constant 0 : index
    %c7 = arith.constant 7 : index
    %c0_24 = arith.constant 0 : index
    %23 = vector.load %arg9[%c0_23, %c7, %c0_24] : memref<2x32x32xf32, #tpu.memory_space<vmem>>, vector<2x16x32xf32>
    %24 = vector.shape_cast %23 : vector<2x16x32xf32> to vector<32x32xf32>
    %c1 = arith.constant 1 : index
    %c0_25 = arith.constant 0 : index
    %c0_26 = arith.constant 0 : index
    %25 = vector.load %arg4[%c1, %c0_25, %c0_26] : memref<15x32x32xbf16, #tpu.memory_space<vmem>>, vector<1x32x32xbf16>
    %26 = vector.shape_cast %25 : vector<1x32x32xbf16> to vector<32x32xbf16>
    %27 = arith.truncf %24 : vector<32x32xf32> to vector<32x32xbf16>
    %cst_27 = arith.constant dense<0.000000e+00> : vector<32x32xf32>
    %28 = tpu.matmul %27, %26, %cst_27 {dimension_numbers = #tpu.dot_dimension_numbers<[1], [0], [0], [1], [0, 0, 1, 1], [], []>} : vector<32x32xbf16>, vector<32x32xbf16>, vector<32x32xf32> -> vector<32x32xf32>
    %29 = arith.addf %22, %28 : vector<32x32xf32>
    %c0_28 = arith.constant 0 : index
    %c8_29 = arith.constant 8 : index
    %c0_30 = arith.constant 0 : index
    %30 = vector.load %arg9[%c0_28, %c8_29, %c0_30] : memref<2x32x32xf32, #tpu.memory_space<vmem>>, vector<2x16x32xf32>
    %31 = vector.shape_cast %30 : vector<2x16x32xf32> to vector<32x32xf32>
    %c2 = arith.constant 2 : index
    %c0_31 = arith.constant 0 : index
    %c0_32 = arith.constant 0 : index
    %32 = vector.load %arg4[%c2, %c0_31, %c0_32] : memref<15x32x32xbf16, #tpu.memory_space<vmem>>, vector<1x32x32xbf16>
    %33 = vector.shape_cast %32 : vector<1x32x32xbf16> to vector<32x32xbf16>
    %34 = arith.truncf %31 : vector<32x32xf32> to vector<32x32xbf16>
    %cst_33 = arith.constant dense<0.000000e+00> : vector<32x32xf32>
    %35 = tpu.matmul %34, %33, %cst_33 {dimension_numbers = #tpu.dot_dimension_numbers<[1], [0], [0], [1], [0, 0, 1, 1], [], []>} : vector<32x32xbf16>, vector<32x32xbf16>, vector<32x32xf32> -> vector<32x32xf32>
    %36 = arith.addf %29, %35 : vector<32x32xf32>
    %c0_34 = arith.constant 0 : index
    %c9 = arith.constant 9 : index
    %c0_35 = arith.constant 0 : index
    %37 = vector.load %arg9[%c0_34, %c9, %c0_35] : memref<2x32x32xf32, #tpu.memory_space<vmem>>, vector<2x16x32xf32>
    %38 = vector.shape_cast %37 : vector<2x16x32xf32> to vector<32x32xf32>
    %c3 = arith.constant 3 : index
    %c0_36 = arith.constant 0 : index
    %c0_37 = arith.constant 0 : index
    %39 = vector.load %arg4[%c3, %c0_36, %c0_37] : memref<15x32x32xbf16, #tpu.memory_space<vmem>>, vector<1x32x32xbf16>
    %40 = vector.shape_cast %39 : vector<1x32x32xbf16> to vector<32x32xbf16>
    %41 = arith.truncf %38 : vector<32x32xf32> to vector<32x32xbf16>
    %cst_38 = arith.constant dense<0.000000e+00> : vector<32x32xf32>
    %42 = tpu.matmul %41, %40, %cst_38 {dimension_numbers = #tpu.dot_dimension_numbers<[1], [0], [0], [1], [0, 0, 1, 1], [], []>} : vector<32x32xbf16>, vector<32x32xbf16>, vector<32x32xf32> -> vector<32x32xf32>
    %43 = arith.addf %36, %42 : vector<32x32xf32>
    %c0_39 = arith.constant 0 : index
    %c10 = arith.constant 10 : index
    %c0_40 = arith.constant 0 : index
    %44 = vector.load %arg9[%c0_39, %c10, %c0_40] : memref<2x32x32xf32, #tpu.memory_space<vmem>>, vector<2x16x32xf32>
    %45 = vector.shape_cast %44 : vector<2x16x32xf32> to vector<32x32xf32>
    %c4 = arith.constant 4 : index
    %c0_41 = arith.constant 0 : index
    %c0_42 = arith.constant 0 : index
    %46 = vector.load %arg4[%c4, %c0_41, %c0_42] : memref<15x32x32xbf16, #tpu.memory_space<vmem>>, vector<1x32x32xbf16>
    %47 = vector.shape_cast %46 : vector<1x32x32xbf16> to vector<32x32xbf16>
    %48 = arith.truncf %45 : vector<32x32xf32> to vector<32x32xbf16>
    %cst_43 = arith.constant dense<0.000000e+00> : vector<32x32xf32>
    %49 = tpu.matmul %48, %47, %cst_43 {dimension_numbers = #tpu.dot_dimension_numbers<[1], [0], [0], [1], [0, 0, 1, 1], [], []>} : vector<32x32xbf16>, vector<32x32xbf16>, vector<32x32xf32> -> vector<32x32xf32>
    %50 = arith.addf %43, %49 : vector<32x32xf32>
    %cst_44 = arith.constant 0.000000e+00 : f32
    %51 = vector.broadcast %cst_44 : f32 to vector<32x32xf32>
    %52 = arith.cmpf ogt, %50, %51 : vector<32x32xf32>
    %cst_45 = arith.constant 2.000000e-01 : f32
    %53 = vector.broadcast %cst_45 : f32 to vector<32x32xf32>
    %54 = arith.mulf %53, %50 : vector<32x32xf32>
    %55 = arith.select %52, %50, %54 : vector<32x32xi1>, vector<32x32xf32>
    %56 = arith.addf %7, %55 : vector<32x32xf32>
    %57 = vector.shape_cast %56 : vector<32x32xf32> to vector<2x16x32xf32>
    %c0_46 = arith.constant 0 : index
    %c8_47 = arith.constant 8 : index
    %c0_48 = arith.constant 0 : index
    %58 = vector.load %arg9[%c0_46, %c8_47, %c0_48] : memref<2x32x32xf32, #tpu.memory_space<vmem>>, vector<2x16x32xf32>
    tpu.vector_store %arg9[%c0_46, %c8_47, %c0_48], %57 {strides = array<i32>} : memref<2x32x32xf32, #tpu.memory_space<vmem>>, vector<2x16x32xf32>,
    %c1_49 = arith.constant 1 : index
    %c0_50 = arith.constant 0 : index
    %c0_51 = arith.constant 0 : index
    %59 = vector.load %arg5[%c1_49, %c0_50, %c0_51] : memref<3x1x32xf32, #tpu.memory_space<vmem>>, vector<1x1x32xf32>
    %60 = vector.shape_cast %59 : vector<1x1x32xf32> to vector<1x32xf32>
    %c0_52 = arith.constant 0 : index
    %c4_53 = arith.constant 4 : index
    %c0_54 = arith.constant 0 : index
    %61 = vector.load %arg9[%c0_52, %c4_53, %c0_54] : memref<2x32x32xf32, #tpu.memory_space<vmem>>, vector<2x16x32xf32>
    %62 = vector.shape_cast %61 : vector<2x16x32xf32> to vector<32x32xf32>
    %c5 = arith.constant 5 : index
    %c0_55 = arith.constant 0 : index
    %c0_56 = arith.constant 0 : index
    %63 = vector.load %arg4[%c5, %c0_55, %c0_56] : memref<15x32x32xbf16, #tpu.memory_space<vmem>>, vector<1x32x32xbf16>
    %64 = vector.shape_cast %63 : vector<1x32x32xbf16> to vector<32x32xbf16>
    %65 = arith.truncf %62 : vector<32x32xf32> to vector<32x32xbf16>
    %cst_57 = arith.constant dense<0.000000e+00> : vector<32x32xf32>
    %66 = tpu.matmul %65, %64, %cst_57 {dimension_numbers = #tpu.dot_dimension_numbers<[1], [0], [0], [1], [0, 0, 1, 1], [], []>} : vector<32x32xbf16>, vector<32x32xbf16>, vector<32x32xf32> -> vector<32x32xf32>
    %67 = vector.broadcast %60 : vector<1x32xf32> to vector<32x32xf32>
    %68 = arith.addf %67, %66 : vector<32x32xf32>
    %c0_58 = arith.constant 0 : index
    %c6_59 = arith.constant 6 : index
    %c0_60 = arith.constant 0 : index
    %69 = vector.load %arg9[%c0_58, %c6_59, %c0_60] : memref<2x32x32xf32, #tpu.memory_space<vmem>>, vector<2x16x32xf32>
    %70 = vector.shape_cast %69 : vector<2x16x32xf32> to vector<32x32xf32>
    %c6_61 = arith.constant 6 : index
    %c0_62 = arith.constant 0 : index
    %c0_63 = arith.constant 0 : index
    %71 = vector.load %arg4[%c6_61, %c0_62, %c0_63] : memref<15x32x32xbf16, #tpu.memory_space<vmem>>, vector<1x32x32xbf16>
    %72 = vector.shape_cast %71 : vector<1x32x32xbf16> to vector<32x32xbf16>
    %73 = arith.truncf %70 : vector<32x32xf32> to vector<32x32xbf16>
    %cst_64 = arith.constant dense<0.000000e+00> : vector<32x32xf32>
    %74 = tpu.matmul %73, %72, %cst_64 {dimension_numbers = #tpu.dot_dimension_numbers<[1], [0], [0], [1], [0, 0, 1, 1], [], []>} : vector<32x32xbf16>, vector<32x32xbf16>, vector<32x32xf32> -> vector<32x32xf32>
    %75 = arith.addf %68, %74 : vector<32x32xf32>
    %c0_65 = arith.constant 0 : index
    %c8_66 = arith.constant 8 : index
    %c0_67 = arith.constant 0 : index
    %76 = vector.load %arg9[%c0_65, %c8_66, %c0_67] : memref<2x32x32xf32, #tpu.memory_space<vmem>>, vector<2x16x32xf32>
    %77 = vector.shape_cast %76 : vector<2x16x32xf32> to vector<32x32xf32>
    %c7_68 = arith.constant 7 : index
    %c0_69 = arith.constant 0 : index
    %c0_70 = arith.constant 0 : index
    %78 = vector.load %arg4[%c7_68, %c0_69, %c0_70] : memref<15x32x32xbf16, #tpu.memory_space<vmem>>, vector<1x32x32xbf16>
    %79 = vector.shape_cast %78 : vector<1x32x32xbf16> to vector<32x32xbf16>
    %80 = arith.truncf %77 : vector<32x32xf32> to vector<32x32xbf16>
    %cst_71 = arith.constant dense<0.000000e+00> : vector<32x32xf32>
    %81 = tpu.matmul %80, %79, %cst_71 {dimension_numbers = #tpu.dot_dimension_numbers<[1], [0], [0], [1], [0, 0, 1, 1], [], []>} : vector<32x32xbf16>, vector<32x32xbf16>, vector<32x32xf32> -> vector<32x32xf32>
    %82 = arith.addf %75, %81 : vector<32x32xf32>
    %c0_72 = arith.constant 0 : index
    %c10_73 = arith.constant 10 : index
    %c0_74 = arith.constant 0 : index
    %83 = vector.load %arg9[%c0_72, %c10_73, %c0_74] : memref<2x32x32xf32, #tpu.memory_space<vmem>>, vector<2x16x32xf32>
    %84 = vector.shape_cast %83 : vector<2x16x32xf32> to vector<32x32xf32>
    %c8_75 = arith.constant 8 : index
    %c0_76 = arith.constant 0 : index
    %c0_77 = arith.constant 0 : index
    %85 = vector.load %arg4[%c8_75, %c0_76, %c0_77] : memref<15x32x32xbf16, #tpu.memory_space<vmem>>, vector<1x32x32xbf16>
    %86 = vector.shape_cast %85 : vector<1x32x32xbf16> to vector<32x32xbf16>
    %87 = arith.truncf %84 : vector<32x32xf32> to vector<32x32xbf16>
    %cst_78 = arith.constant dense<0.000000e+00> : vector<32x32xf32>
    %88 = tpu.matmul %87, %86, %cst_78 {dimension_numbers = #tpu.dot_dimension_numbers<[1], [0], [0], [1], [0, 0, 1, 1], [], []>} : vector<32x32xbf16>, vector<32x32xbf16>, vector<32x32xf32> -> vector<32x32xf32>
    %89 = arith.addf %82, %88 : vector<32x32xf32>
    %c0_79 = arith.constant 0 : index
    %c12 = arith.constant 12 : index
    %c0_80 = arith.constant 0 : index
    %90 = vector.load %arg9[%c0_79, %c12, %c0_80] : memref<2x32x32xf32, #tpu.memory_space<vmem>>, vector<2x16x32xf32>
    %91 = vector.shape_cast %90 : vector<2x16x32xf32> to vector<32x32xf32>
    %c9_81 = arith.constant 9 : index
    %c0_82 = arith.constant 0 : index
    %c0_83 = arith.constant 0 : index
    %92 = vector.load %arg4[%c9_81, %c0_82, %c0_83] : memref<15x32x32xbf16, #tpu.memory_space<vmem>>, vector<1x32x32xbf16>
    %93 = vector.shape_cast %92 : vector<1x32x32xbf16> to vector<32x32xbf16>
    %94 = arith.truncf %91 : vector<32x32xf32> to vector<32x32xbf16>
    %cst_84 = arith.constant dense<0.000000e+00> : vector<32x32xf32>
    %95 = tpu.matmul %94, %93, %cst_84 {dimension_numbers = #tpu.dot_dimension_numbers<[1], [0], [0], [1], [0, 0, 1, 1], [], []>} : vector<32x32xbf16>, vector<32x32xbf16>, vector<32x32xf32> -> vector<32x32xf32>
    %96 = arith.addf %89, %95 : vector<32x32xf32>
    %cst_85 = arith.constant 0.000000e+00 : f32
    %97 = vector.broadcast %cst_85 : f32 to vector<32x32xf32>
    %98 = arith.cmpf ogt, %96, %97 : vector<32x32xf32>
    %cst_86 = arith.constant 2.000000e-01 : f32
    %99 = vector.broadcast %cst_86 : f32 to vector<32x32xf32>
    %100 = arith.mulf %99, %96 : vector<32x32xf32>
    %101 = arith.select %98, %96, %100 : vector<32x32xi1>, vector<32x32xf32>
    %102 = arith.addf %56, %101 : vector<32x32xf32>
    %103 = vector.shape_cast %102 : vector<32x32xf32> to vector<2x16x32xf32>
    %c0_87 = arith.constant 0 : index
    %c8_88 = arith.constant 8 : index
    %c0_89 = arith.constant 0 : index
    %104 = vector.load %arg9[%c0_87, %c8_88, %c0_89] : memref<2x32x32xf32, #tpu.memory_space<vmem>>, vector<2x16x32xf32>
    tpu.vector_store %arg9[%c0_87, %c8_88, %c0_89], %103 {strides = array<i32>} : memref<2x32x32xf32, #tpu.memory_space<vmem>>, vector<2x16x32xf32>,
    %c2_90 = arith.constant 2 : index
    %c0_91 = arith.constant 0 : index
    %c0_92 = arith.constant 0 : index
    %105 = vector.load %arg5[%c2_90, %c0_91, %c0_92] : memref<3x1x32xf32, #tpu.memory_space<vmem>>, vector<1x1x32xf32>
    %106 = vector.shape_cast %105 : vector<1x1x32xf32> to vector<1x32xf32>
    %c0_93 = arith.constant 0 : index
    %c0_94 = arith.constant 0 : index
    %c0_95 = arith.constant 0 : index
    %107 = vector.load %arg9[%c0_93, %c0_94, %c0_95] : memref<2x32x32xf32, #tpu.memory_space<vmem>>, vector<2x16x32xf32>
    %108 = vector.shape_cast %107 : vector<2x16x32xf32> to vector<32x32xf32>
    %c10_96 = arith.constant 10 : index
    %c0_97 = arith.constant 0 : index
    %c0_98 = arith.constant 0 : index
    %109 = vector.load %arg4[%c10_96, %c0_97, %c0_98] : memref<15x32x32xbf16, #tpu.memory_space<vmem>>, vector<1x32x32xbf16>
    %110 = vector.shape_cast %109 : vector<1x32x32xbf16> to vector<32x32xbf16>
    %111 = arith.truncf %108 : vector<32x32xf32> to vector<32x32xbf16>
    %cst_99 = arith.constant dense<0.000000e+00> : vector<32x32xf32>
    %112 = tpu.matmul %111, %110, %cst_99 {dimension_numbers = #tpu.dot_dimension_numbers<[1], [0], [0], [1], [0, 0, 1, 1], [], []>} : vector<32x32xbf16>, vector<32x32xbf16>, vector<32x32xf32> -> vector<32x32xf32>
    %113 = vector.broadcast %106 : vector<1x32xf32> to vector<32x32xf32>
    %114 = arith.addf %113, %112 : vector<32x32xf32>
    %c0_100 = arith.constant 0 : index
    %c4_101 = arith.constant 4 : index
    %c0_102 = arith.constant 0 : index
    %115 = vector.load %arg9[%c0_100, %c4_101, %c0_102] : memref<2x32x32xf32, #tpu.memory_space<vmem>>, vector<2x16x32xf32>
    %116 = vector.shape_cast %115 : vector<2x16x32xf32> to vector<32x32xf32>
    %c11 = arith.constant 11 : index
    %c0_103 = arith.constant 0 : index
    %c0_104 = arith.constant 0 : index
    %117 = vector.load %arg4[%c11, %c0_103, %c0_104] : memref<15x32x32xbf16, #tpu.memory_space<vmem>>, vector<1x32x32xbf16>
    %118 = vector.shape_cast %117 : vector<1x32x32xbf16> to vector<32x32xbf16>
    %119 = arith.truncf %116 : vector<32x32xf32> to vector<32x32xbf16>
    %cst_105 = arith.constant dense<0.000000e+00> : vector<32x32xf32>
    %120 = tpu.matmul %119, %118, %cst_105 {dimension_numbers = #tpu.dot_dimension_numbers<[1], [0], [0], [1], [0, 0, 1, 1], [], []>} : vector<32x32xbf16>, vector<32x32xbf16>, vector<32x32xf32> -> vector<32x32xf32>
    %121 = arith.addf %114, %120 : vector<32x32xf32>
    %c0_106 = arith.constant 0 : index
    %c8_107 = arith.constant 8 : index
    %c0_108 = arith.constant 0 : index
    %122 = vector.load %arg9[%c0_106, %c8_107, %c0_108] : memref<2x32x32xf32, #tpu.memory_space<vmem>>, vector<2x16x32xf32>
    %123 = vector.shape_cast %122 : vector<2x16x32xf32> to vector<32x32xf32>
    %c12_109 = arith.constant 12 : index
    %c0_110 = arith.constant 0 : index
    %c0_111 = arith.constant 0 : index
    %124 = vector.load %arg4[%c12_109, %c0_110, %c0_111] : memref<15x32x32xbf16, #tpu.memory_space<vmem>>, vector<1x32x32xbf16>
    %125 = vector.shape_cast %124 : vector<1x32x32xbf16> to vector<32x32xbf16>
    %126 = arith.truncf %123 : vector<32x32xf32> to vector<32x32xbf16>
    %cst_112 = arith.constant dense<0.000000e+00> : vector<32x32xf32>
    %127 = tpu.matmul %126, %125, %cst_112 {dimension_numbers = #tpu.dot_dimension_numbers<[1], [0], [0], [1], [0, 0, 1, 1], [], []>} : vector<32x32xbf16>, vector<32x32xbf16>, vector<32x32xf32> -> vector<32x32xf32>
    %128 = arith.addf %121, %127 : vector<32x32xf32>
    %c0_113 = arith.constant 0 : index
    %c12_114 = arith.constant 12 : index
    %c0_115 = arith.constant 0 : index
    %129 = vector.load %arg9[%c0_113, %c12_114, %c0_115] : memref<2x32x32xf32, #tpu.memory_space<vmem>>, vector<2x16x32xf32>
    %130 = vector.shape_cast %129 : vector<2x16x32xf32> to vector<32x32xf32>
    %c13 = arith.constant 13 : index
    %c0_116 = arith.constant 0 : index
    %c0_117 = arith.constant 0 : index
    %131 = vector.load %arg4[%c13, %c0_116, %c0_117] : memref<15x32x32xbf16, #tpu.memory_space<vmem>>, vector<1x32x32xbf16>
    %132 = vector.shape_cast %131 : vector<1x32x32xbf16> to vector<32x32xbf16>
    %133 = arith.truncf %130 : vector<32x32xf32> to vector<32x32xbf16>
    %cst_118 = arith.constant dense<0.000000e+00> : vector<32x32xf32>
    %134 = tpu.matmul %133, %132, %cst_118 {dimension_numbers = #tpu.dot_dimension_numbers<[1], [0], [0], [1], [0, 0, 1, 1], [], []>} : vector<32x32xbf16>, vector<32x32xbf16>, vector<32x32xf32> -> vector<32x32xf32>
    %135 = arith.addf %128, %134 : vector<32x32xf32>
    %c0_119 = arith.constant 0 : index
    %c16 = arith.constant 16 : index
    %c0_120 = arith.constant 0 : index
    %136 = vector.load %arg9[%c0_119, %c16, %c0_120] : memref<2x32x32xf32, #tpu.memory_space<vmem>>, vector<2x16x32xf32>
    %137 = vector.shape_cast %136 : vector<2x16x32xf32> to vector<32x32xf32>
    %c14 = arith.constant 14 : index
    %c0_121 = arith.constant 0 : index
    %c0_122 = arith.constant 0 : index
    %138 = vector.load %arg4[%c14, %c0_121, %c0_122] : memref<15x32x32xbf16, #tpu.memory_space<vmem>>, vector<1x32x32xbf16>
    %139 = vector.shape_cast %138 : vector<1x32x32xbf16> to vector<32x32xbf16>
    %140 = arith.truncf %137 : vector<32x32xf32> to vector<32x32xbf16>
    %cst_123 = arith.constant dense<0.000000e+00> : vector<32x32xf32>
    %141 = tpu.matmul %140, %139, %cst_123 {dimension_numbers = #tpu.dot_dimension_numbers<[1], [0], [0], [1], [0, 0, 1, 1], [], []>} : vector<32x32xbf16>, vector<32x32xbf16>, vector<32x32xf32> -> vector<32x32xf32>
    %142 = arith.addf %135, %141 : vector<32x32xf32>
    %cst_124 = arith.constant 0.000000e+00 : f32
    %143 = vector.broadcast %cst_124 : f32 to vector<32x32xf32>
    %144 = arith.cmpf ogt, %142, %143 : vector<32x32xf32>
    %cst_125 = arith.constant 2.000000e-01 : f32
    %145 = vector.broadcast %cst_125 : f32 to vector<32x32xf32>
    %146 = arith.mulf %145, %142 : vector<32x32xf32>
    %147 = arith.select %144, %142, %146 : vector<32x32xi1>, vector<32x32xf32>
    %148 = arith.addf %102, %147 : vector<32x32xf32>
    %c0_126 = arith.constant 0 : index
    %c0_127 = arith.constant 0 : index
    %149 = vector.load %arg6[%c0_126, %c0_127] : memref<32x128xbf16, #tpu.memory_space<vmem>>, vector<32x128xbf16>
    %150 = arith.truncf %148 : vector<32x32xf32> to vector<32x32xbf16>
    %cst_128 = arith.constant dense<0.000000e+00> : vector<32x128xf32>
    %151 = tpu.matmul %150, %149, %cst_128 {dimension_numbers = #tpu.dot_dimension_numbers<[1], [0], [0], [1], [0, 0, 1, 1], [], []>} : vector<32x32xbf16>, vector<32x128xbf16>, vector<32x128xf32> -> vector<32x128xf32>
    %c0_129 = arith.constant 0 : index
    %c0_130 = arith.constant 0 : index
    %152 = vector.load %arg7[%c0_129, %c0_130] : memref<1x128xf32, #tpu.memory_space<vmem>>, vector<1x128xf32>
    %153 = vector.broadcast %152 : vector<1x128xf32> to vector<32x128xf32>
    %154 = arith.addf %151, %153 : vector<32x128xf32>
    %155 = vector.shape_cast %154 : vector<32x128xf32> to vector<2x16x128xf32>
    %c0_131 = arith.constant 0 : index
    %c0_132 = arith.constant 0 : index
    %c0_133 = arith.constant 0 : index
    %156 = vector.load %arg8[%c0_131, %c0_132, %c0_133] : memref<2x16x128xf32, #tpu.memory_space<vmem>>, vector<2x16x128xf32>
    tpu.vector_store %arg8[%c0_131, %c0_132, %c0_133], %155 {strides = array<i32>} : memref<2x16x128xf32, #tpu.memory_space<vmem>>, vector<2x16x128xf32>,
    return
  }
  func.func @transform_0(%arg0: i32) -> (i32, i32, i32) {
    %c0_i32 = arith.constant 0 : i32
    %c0_i32_0 = arith.constant 0 : i32
    %c0_i32_1 = arith.constant 0 : i32
    %c0_i32_2 = arith.constant 0 : i32
    return %c0_i32, %c0_i32_0, %c0_i32_1 : i32, i32, i32
  }
  func.func @transform_1(%arg0: i32) -> (i32, i32) {
    %c0_i32 = arith.constant 0 : i32
    %c0_i32_0 = arith.constant 0 : i32
    %c0_i32_1 = arith.constant 0 : i32
    return %c0_i32, %c0_i32_0 : i32, i32
  }
  func.func @transform_2(%arg0: i32) -> (i32, i32) {
    %c0_i32 = arith.constant 0 : i32
    %c0_i32_0 = arith.constant 0 : i32
    %c0_i32_1 = arith.constant 0 : i32
    return %c0_i32, %c0_i32_0 : i32, i32
  }
  func.func @transform_3(%arg0: i32) -> (i32, i32, i32) {
    %c0_i32 = arith.constant 0 : i32
    %c0_i32_0 = arith.constant 0 : i32
    %c0_i32_1 = arith.constant 0 : i32
    %c0_i32_2 = arith.constant 0 : i32
    return %c0_i32, %c0_i32_0, %c0_i32_1 : i32, i32, i32
  }
  func.func @transform_4(%arg0: i32) -> (i32, i32, i32) {
    %c0_i32 = arith.constant 0 : i32
    %c0_i32_0 = arith.constant 0 : i32
    %c0_i32_1 = arith.constant 0 : i32
    %c0_i32_2 = arith.constant 0 : i32
    return %c0_i32, %c0_i32_0, %c0_i32_1 : i32, i32, i32
  }
  func.func @transform_5(%arg0: i32) -> (i32, i32) {
    %c0_i32 = arith.constant 0 : i32
    %c0_i32_0 = arith.constant 0 : i32
    %c0_i32_1 = arith.constant 0 : i32
    return %c0_i32, %c0_i32_0 : i32, i32
  }
  func.func @transform_6(%arg0: i32) -> (i32, i32) {
    %c0_i32 = arith.constant 0 : i32
    %c0_i32_0 = arith.constant 0 : i32
    %c0_i32_1 = arith.constant 0 : i32
    return %c0_i32, %c0_i32_0 : i32, i32
  }
  func.func @transform_7(%arg0: i32) -> (i32, i32, i32) {
    %c0_i32 = arith.constant 0 : i32
    %c0_i32_0 = arith.constant 0 : i32
    %c0_i32_1 = arith.constant 0 : i32
    %c0_i32_2 = arith.constant 0 : i32
    return %c0_i32, %c0_i32_0, %c0_i32_1 : i32, i32, i32
  }
}

</mosaic_0001>

<bundles_post_ra>
// kernel: decocer_forward.1
= control target key start
LH: loop header
LB: loop body
LE: loop exit
PB: predicated region body
PF: predicated region fallthrough
CT: control target
= control target key end

     0   :  { %vm73_vm0 = vcmask 523264   ;;  %s2300_s0 = inlined_call_operand.vmem [shape: f32[2,16,64], index: 0, kind: input, shape index: {}]   ;;  %s2301_s1 = inlined_call_operand.vmem [shape: bf16[64,32], index: 1, kind: input, shape index: {}]   ;;  %s2302_s2 = inlined_call_operand.vmem [shape: f32[1,32], index: 2, kind: input, shape index: {}]   ;;  %s2303_s3 = inlined_call_operand.vmem [shape: bf16[15,32,32], index: 3, kind: input, shape index: {}]   ;;  %s2304_s4 = inlined_call_operand.vmem [shape: f32[3,1,32], index: 4, kind: input, shape index: {}]   ;;  %s2305_s5 = inlined_call_operand.vmem [shape: bf16[32,128], index: 5, kind: input, shape index: {}]   ;;  %s2306_s6 = inlined_call_operand.vmem [shape: f32[1,128], index: 6, kind: input, shape index: {}]   ;;  %s2307_s7 = inlined_call_operand.hbm [shape: f32[2,16,128], index: 7, kind: output, shape index: {}]  }
   0x1   :  { %v1953_v0 = vld [vmem:[%s2301_s1] sm:$0xff]   ;;  %v1954_v1 = vld [vmem:[%s2301_s1 + $0x8] sm:$0xff]   ;;  %v1955_v2 = vld [vmem:[%s2301_s1 + $0x10] sm:$0xff]  }
   0x2   :  { %1749 = vmatprep.subr.bf16.mxu0 %v1953_v0  ;;  %v28_v3 = vld [vmem:[%s2300_s0] sm:$0xff]  ;;  %v29_v4 = vld [vmem:[%s2300_s0 + $0x8] sm:$0xff]  ;;  %v1956_v6 = vld [vmem:[%s2301_s1 + $0x18] sm:$0xff]  }
   0x3   :  { %1750 = vmatpush3.bf16.msra.mxu0 %v1953_v0  ;;  %v40_v5 = vpack.c.bf16 %v29_v4, %v28_v3  ;;  %v30_v7 = vld [vmem:[%s2300_s0 + $0x10] sm:$0xff]  ;;  %v31_v8 = vld [vmem:[%s2300_s0 + $0x18] sm:$0xff] }
   0x4   :  { %1751 = vmatprep.subr.bf16.mxu0 %v1954_v1  ;;  %v41_v9 = vpack.c.bf16 %v31_v8, %v30_v7 }
   0x5   :  { %1757 = vmatprep.mubr.msk.bf16.mxu0 %vm73_vm0, %v40_v5 }
   0x7   :  { %1752 = vmatpush3.bf16.msra.mxu0 %v1954_v1 }
   0x8   :  { %1753 = vmatprep.subr.bf16.mxu0 %v1955_v2 }
   0xb   :  { %1754 = vmatpush3.bf16.msra.mxu0 %v1955_v2 }
   0xc   :  { %1755 = vmatprep.subr.bf16.mxu0 %v1956_v6 }
   0xf   :  { %1756 = vmatpush3.bf16.msra.mxu0 %v1956_v6 }
  0x12   :  { %1758 = vmatmul.mubr.msk.bf16.vlgmr.msra.gmra.mrb[0].mxu0 %vm73_vm0, %v41_v9 }
  0x13   :  { %12 = vsyncpa [#allocation4], 0  ;;  %vm129_vm1 = vcmask 261120   ;;  %v2013_v10 = vmov 0.0   ;;  %v1957_v11 = vld [vmem:[%s2303_s3 + $0x10] sm:$0xff]   ;;  %v1958_v12 = vld [vmem:[%s2303_s3] sm:$0xff]  }
  0x14   :  { %130 = vst.msk [vmem:[#allocation2] sm:$0xff] %vm129_vm1, %v2013_v10  ;;  %131 = vst.msk [vmem:[#allocation2 + $0x20] sm:$0xff] %vm129_vm1, %v2013_v10  ;;  %v1959_v13 = vld [vmem:[%s2303_s3 + $0x18] sm:$0xff]   ;;  %v1960_v14 = vld [vmem:[%s2303_s3 + $0x8] sm:$0xff]   ;;  %1769 = vmatprep.subr.bf16.mxu1 %v1957_v11  ;;  %1761 = vmatprep.subr.bf16.mxu0 %v1958_v12  ;;  %s2014_s10 = smov [#allocation3]  }
  0x15   :  { %132 = vst.msk [vmem:[#allocation2 + $0x18] sm:$0xff] %vm129_vm1, %v2013_v10  ;;  %133 = vst.msk [vmem:[#allocation2 + $0x38] sm:$0xff] %vm129_vm1, %v2013_v10  ;;  %1770 = vmatpush3.bf16.msra.mxu1 %v1957_v11  ;;  %1762 = vmatpush3.bf16.msra.mxu0 %v1958_v12  ;;  %v1961_v15 = vld [vmem:[%s2303_s3 + $0x20] sm:$0xff]   ;;  %v1962_v39 = vld [vmem:[%s2303_s3 + $0x28] sm:$0xff]   ;;  %s1535_s11 = sshll.u32 %s2014_s10, 4  ;;  %s1536_s11 = int_to_ptr.vmem [resolvable:$true] %s1535_s11 }
  0x16   :  { %1771 = vmatprep.subr.bf16.mxu1 %v1959_v13  ;;  %1763 = vmatprep.subr.bf16.mxu0 %v1960_v14  ;;  %v1546_v16 = vld [vmem:[%s2302_s2] ss:$0 sm:$0xff]  ;;  %v1963_v41 = vld [vmem:[%s2303_s3 + $0x30] sm:$0xff]   ;;  %v1964_v47 = vld [vmem:[%s2303_s3 + $0x38] sm:$0xff]   ;;  %s1989_s12 = scalar_lea.vmem %s1536_s11, 512  ;;  %p1994_p1 = scmp.lt.s32.totalorder %s1536_s11, %s1536_s11 }
  0x17   :  { %v1965_v49 = vld [vmem:[%s2303_s3 + $0x40] sm:$0xff]   ;;  %v1966_v55 = vld [vmem:[%s2303_s3 + $0x48] sm:$0xff]   ;;  %v1967_v60 = vld [vmem:[%s2303_s3 + $0x50] sm:$0xff]   ;;  %p1990_p0 = scmp.ne.s32.totalorder %s1536_s11, %s1989_s12  ;;  %p1995_p2 = scmp.lt.s32.totalorder %s1989_s12, %s1989_s12 }
  0x18   :  { %v1968_v61 = vld [vmem:[%s2303_s3 + $0x58] sm:$0xff]   ;;  %v1969_v62 = vld [vmem:[%s2303_s3 + $0x60] sm:$0xff]  }
  0x19   :  { %1772 = vmatpush3.bf16.msra.mxu1 %v1959_v13  ;;  %1764 = vmatpush3.bf16.msra.mxu0 %v1960_v14  ;;  %v1557_v3 = vld [vmem:[%s2304_s4] ss:$0 sm:$0xff]  ;;  %p1996_p3 = por %p1995_p2, %p1994_p1 }
  0x1a   :  { %1777 = vmatprep.subr.bf16.mxu1 %v1961_v15  ;;  %1801 = vmatprep.subr.bf16.mxu0 %v1967_v60 }
  0x1b   :  { %p1997_p4 = pnand %p1996_p3, %p1990_p0 }
  0xe5   :  { %v1759_v17 = vpop.f32.mrb[0].mxu0 }
  0xe6   :  { %v2103_v18 = vadd.f32 %v1759_v17, %v1546_v16  ;;  %v114_v19 = vpop.f32.mrb[1].mxu0 }
  0xe7   :  { %v2105_v20 = vadd.f32 %v1546_v16, %v114_v19  ;;  %v1760_v21 = vpop.f32.mrb[2].mxu0 }
  0xe8   :  { %136 = vst.msk [vmem:[#allocation2 + $0x28] sm:$0xff] %vm129_vm1, %v2103_v18  ;;  %v2109_v22 = vadd.f32 %v1760_v21, %v1546_v16  ;;  %v117_v23 = vpop.f32.mrb[3].mxu0 }
  0xe9   :  { %134 = vst.msk [vmem:[#allocation2 + $0x8] sm:$0xff] %vm129_vm1, %v2105_v20  ;;  %v2113_v24 = vadd.f32 %v1546_v16, %v117_v23 }
  0xea   :  { %137 = vst.msk [vmem:[#allocation2 + $0x30] sm:$0xff] %vm129_vm1, %v2109_v22 }
  0xeb   :  { %135 = vst.msk [vmem:[#allocation2 + $0x10] sm:$0xff] %vm129_vm1, %v2113_v24 }
  0xef   :  { %v141_v34 = vld [vmem:[#allocation2 + $0x26] sm:$0xff] }
  0xf0   :  { %v139_v25 = vld [vmem:[#allocation2 + $0x6] sm:$0xff] }
  0xf1   :  { %v226_v26 = vld [vmem:[#allocation2 + $0x7] sm:$0xff]  ;;  %v229_v28 = vld [vmem:[#allocation2 + $0x2f] sm:$0xff] }
  0xf2   :  { %v142_v27 = vld [vmem:[#allocation2 + $0x2e] sm:$0xff] }
  0xf3   :  { %v140_v29 = vld [vmem:[#allocation2 + $0xe] sm:$0xff]  ;;  %v148_v36 = vpack.c.bf16 %v142_v27, %v141_v34 }
  0xf4   :  { %v227_v30 = vld [vmem:[#allocation2 + $0xf] sm:$0xff]  ;;  %v147_v32 = vpack.c.bf16 %v140_v29, %v139_v25  ;;  %v228_v35 = vld [vmem:[#allocation2 + $0x27] sm:$0xff] }
  0xf5   :  { %v309_v31 = vld [vmem:[#allocation2 + $0x10] sm:$0xff]  ;;  %v235_v33 = vpack.c.bf16 %v227_v30, %v226_v26  ;;  %v236_v37 = vpack.c.bf16 %v229_v28, %v228_v35  ;;  %v308_v38 = vld [vmem:[#allocation2 + $0x8] sm:$0xff] }
  0xf6   :  { %1765 = vmatprep.mubr.msk.bf16.mxu0 %vm129_vm1, %v147_v32  ;;  %v317_v40 = vpack.c.bf16 %v309_v31, %v308_v38  ;;  %v311_v42 = vld [vmem:[#allocation2 + $0x30] sm:$0xff]  ;;  %v310_v45 = vld [vmem:[#allocation2 + $0x28] sm:$0xff] }
  0xf7   :  { %1773 = vmatprep.mubr.msk.bf16.mxu1 %vm129_vm1, %v235_v33  ;;  %1766 = vmatmul.mubr.msk.bf16.vlgmr.msra.gmra.mrb[4].mxu0 %vm129_vm1, %v148_v36  ;;  %v390_v43 = vld [vmem:[#allocation2 + $0x9] sm:$0xff]  ;;  %v391_v44 = vld [vmem:[#allocation2 + $0x11] sm:$0xff]  ;;  %v318_v46 = vpack.c.bf16 %v311_v42, %v310_v45 }
  0xf8   :  { %1774 = vmatmul.mubr.msk.bf16.vlgmr.msra.gmra.mrb[0].mxu1 %vm129_vm1, %v236_v37  ;;  %v399_v48 = vpack.c.bf16 %v391_v44, %v390_v43  ;;  %v392_v50 = vld [vmem:[#allocation2 + $0x29] sm:$0xff]  ;;  %v393_v51 = vld [vmem:[#allocation2 + $0x31] sm:$0xff]  ;;  %1802 = vmatpush3.bf16.msra.mxu0 %v1967_v60 }
  0xf9   :  { %1778 = vmatpush3.bf16.msra.mxu1 %v1961_v15  ;;  %1781 = vmatprep.mubr.msk.bf16.mxu1 %vm129_vm1, %v317_v40  ;;  %v472_v52 = vld [vmem:[#allocation2 + $0xa] sm:$0xff]  ;;  %v473_v53 = vld [vmem:[#allocation2 + $0x12] sm:$0xff]  ;;  %v400_v54 = vpack.c.bf16 %v393_v51, %v392_v50 }
  0xfa   :  { %1779 = vmatprep.subr.bf16.mxu1 %v1962_v39  ;;  %v481_v56 = vpack.c.bf16 %v473_v53, %v472_v52  ;;  %v474_v57 = vld [vmem:[#allocation2 + $0x2a] sm:$0xff]  ;;  %v475_v58 = vld [vmem:[#allocation2 + $0x32] sm:$0xff]  ;;  %1803 = vmatprep.subr.bf16.mxu0 %v1968_v61 }
  0xfb   :  { %v482_v59 = vpack.c.bf16 %v475_v58, %v474_v57  ;;  %v1970_v37 = vld [vmem:[%s2303_s3 + $0x68] sm:$0xff]   ;;  %v1971_v38 = vld [vmem:[%s2303_s3 + $0x70] sm:$0xff]   ;;  %v1972_v44 = vld [vmem:[%s2303_s3 + $0x78] sm:$0xff]  }
  0xfc   :  { %1804 = vmatpush3.bf16.msra.mxu0 %v1968_v61  ;;  %v1974_v52 = vld [vmem:[%s2303_s3 + $0x88] sm:$0xff]  }
  0xfd   :  { %1780 = vmatpush3.bf16.msra.mxu1 %v1962_v39  ;;  %1809 = vmatprep.subr.bf16.mxu0 %v1969_v62 }
  0xfe   :  { %1785 = vmatprep.subr.bf16.mxu1 %v1963_v41 }
 0x104   :  { %1782 = vmatmul.mubr.msk.bf16.vlgmr.msra.gmra.mrb[0].mxu1 %vm129_vm1, %v318_v46  ;;  %v1973_v46 = vld [vmem:[%s2303_s3 + $0x80] sm:$0xff]  }
 0x105   :  { %1786 = vmatpush3.bf16.msra.mxu1 %v1963_v41  ;;  %1789 = vmatprep.mubr.msk.bf16.mxu1 %vm129_vm1, %v399_v48 }
 0x106   :  { %1787 = vmatprep.subr.bf16.mxu1 %v1964_v47 }
 0x109   :  { %1788 = vmatpush3.bf16.msra.mxu1 %v1964_v47 }
 0x10a   :  { %1793 = vmatprep.subr.bf16.mxu1 %v1965_v49 }
 0x110   :  { %1790 = vmatmul.mubr.msk.bf16.vlgmr.msra.gmra.mrb[0].mxu1 %vm129_vm1, %v400_v54  ;;  %v1975_v54 = vld [vmem:[%s2303_s3 + $0x90] sm:$0xff]  }
 0x111   :  { %1794 = vmatpush3.bf16.msra.mxu1 %v1965_v49  ;;  %1797 = vmatprep.mubr.msk.bf16.mxu1 %vm129_vm1, %v481_v56 }
 0x112   :  { %1795 = vmatprep.subr.bf16.mxu1 %v1966_v55 }
 0x115   :  { %1796 = vmatpush3.bf16.msra.mxu1 %v1966_v55 }
 0x11c   :  { %1798 = vmatmul.mubr.msk.bf16.vlgmr.msra.gmra.mrb[0].mxu1 %vm129_vm1, %v482_v59  ;;  %v1976_v59 = vld [vmem:[%s2303_s3 + $0x98] sm:$0xff]  }
 0x1ca   :  { %v1767_v63 = vpop.f32.mrb[4].mxu0 }
 0x1cb   :  { %v201_v0 = vpop.f32.mrb[5].mxu0  ;;  %v224_v4 = vadd.f32 %v1767_v63, %v1557_v3  ;;  %v1977_v63 = vld [vmem:[%s2303_s3 + $0xa0] sm:$0xff]  }
 0x1cc   :  { %v1768_v1 = vpop.f32.mrb[6].mxu0  ;;  %v222_v5 = vadd.f32 %v1557_v3, %v201_v0  ;;  %v1978_v0 = vld [vmem:[%s2303_s3 + $0xa8] sm:$0xff]   ;;  %1841 = vmatprep.subr.bf16.mxu1 %v1977_v63 }
 0x1cd   :  { %v204_v2 = vpop.f32.mrb[7].mxu0  ;;  %v225_v7 = vadd.f32 %v1768_v1, %v1557_v3  ;;  %1842 = vmatpush3.bf16.msra.mxu1 %v1977_v63  ;;  %v1979_v1 = vld [vmem:[%s2303_s3 + $0xb0] sm:$0xff]  }
 0x1ce   :  { %v223_v10 = vadd.f32 %v1557_v3, %v204_v2  ;;  %1843 = vmatprep.subr.bf16.mxu1 %v1978_v0  ;;  %v1599_v2 = vld [vmem:[%s2304_s4 + $0x1] ss:$0 sm:$0xff] }
 0x1d1   :  { %1844 = vmatpush3.bf16.msra.mxu1 %v1978_v0 }
 0x1d2   :  { %1849 = vmatprep.subr.bf16.mxu1 %v1979_v1 }
 0x1ef   :  { %v1799_v6 = vpop.f32.mrb[0].mxu1 }
 0x1f0   :  { %v1890_v8 = vadd.f32 %v1799_v6, %v224_v4  ;;  %v535_v9 = vpop.f32.mrb[1].mxu1 }
 0x1f1   :  { %v1892_v11 = vadd.f32 %v535_v9, %v222_v5  ;;  %v1800_v12 = vpop.f32.mrb[2].mxu1 }
 0x1f2   :  { %vm556_vm2 = vcmp.gt.f32.partialorder %v1890_v8, 0.0  ;;  %v560_v13 = vmul.f32 0.2, %v1890_v8  ;;  %v1894_v14 = vadd.f32 %v1800_v12, %v225_v7  ;;  %v538_v15 = vpop.f32.mrb[3].mxu1 }
 0x1f3   :  { %vm554_vm3 = vcmp.gt.f32.partialorder %v1892_v11, 0.0  ;;  %v558_v16 = vmul.f32 0.2, %v1892_v11  ;;  %v1896_v17 = vadd.f32 %v538_v15, %v223_v10 }
 0x1f4   :  { %v564_v19 = vsel %vm556_vm2, %v1890_v8, %v560_v13  ;;  %vm557_vm4 = vcmp.gt.f32.partialorder %v1894_v14, 0.0  ;;  %v561_v21 = vmul.f32 0.2, %v1894_v14 }
 0x1f5   :  { %v2157_v23 = vadd.f32 %v564_v19, %v2103_v18  ;;  %v562_v25 = vsel %vm554_vm3, %v1892_v11, %v558_v16  ;;  %vm555_vm5 = vcmp.gt.f32.partialorder %v1896_v17, 0.0  ;;  %v559_v26 = vmul.f32 0.2, %v1896_v17 }
 0x1f6   :  { %v2160_v27 = vadd.f32 %v562_v25, %v2105_v20  ;;  %v565_v28 = vsel %vm557_vm4, %v1894_v14, %v561_v21 }
 0x1f7   :  { %572 = vst.msk [vmem:[#allocation2 + $0x28] sm:$0xff] %vm129_vm1, %v2157_v23  ;;  %v2165_v29 = vadd.f32 %v565_v28, %v2109_v22  ;;  %v563_v30 = vsel %vm555_vm5, %v1896_v17, %v559_v26  ;;  %v1016_v28 = vld [vmem:[#allocation2 + $0x20] sm:$0xff] }
 0x1f8   :  { %570 = vst.msk [vmem:[#allocation2 + $0x8] sm:$0xff] %vm129_vm1, %v2160_v27  ;;  %v2170_v18 = vadd.f32 %v563_v30, %v2113_v24 }
 0x1f9   :  { %573 = vst.msk [vmem:[#allocation2 + $0x30] sm:$0xff] %vm129_vm1, %v2165_v29 }
 0x1fa   :  { %571 = vst.msk [vmem:[#allocation2 + $0x10] sm:$0xff] %vm129_vm1, %v2170_v18 }
 0x1fe   :  { %v578_v22 = vld [vmem:[#allocation2 + $0x24] sm:$0xff] }
 0x1ff   :  { %v576_v31 = vld [vmem:[#allocation2 + $0x4] sm:$0xff] }
 0x200   :  { %v579_v20 = vld [vmem:[#allocation2 + $0x2c] sm:$0xff]  ;;  %v913_v61 = vld [vmem:[#allocation2 + $0x34] sm:$0xff] }
 0x201   :  { %v577_v32 = vld [vmem:[#allocation2 + $0xc] sm:$0xff]  ;;  %v586_v35 = vpack.c.bf16 %v579_v20, %v578_v22  ;;  %v911_v57 = vld [vmem:[#allocation2 + $0x14] sm:$0xff]  ;;  %v1981_v22 = vld [vmem:[%s2303_s3 + $0xc0] sm:$0xff]  }
 0x202   :  { %v665_v33 = vld [vmem:[#allocation2 + $0xe] sm:$0xff]  ;;  %v585_v34 = vpack.c.bf16 %v577_v32, %v576_v31  ;;  %v664_v36 = vld [vmem:[#allocation2 + $0x6] sm:$0xff]  ;;  %v919_v60 = vpack.c.bf16 %v911_v57, %v577_v32 }
 0x203   :  { %v673_v24 = vpack.c.bf16 %v665_v33, %v664_v36  ;;  %v667_v39 = vld [vmem:[#allocation2 + $0x2e] sm:$0xff]  ;;  %v666_v41 = vld [vmem:[#allocation2 + $0x26] sm:$0xff] }
 0x204   :  { %1805 = vmatprep.mubr.msk.bf16.mxu0 %vm129_vm1, %v585_v34  ;;  %v747_v40 = vld [vmem:[#allocation2 + $0x10] sm:$0xff]  ;;  %v674_v42 = vpack.c.bf16 %v667_v39, %v666_v41  ;;  %v746_v43 = vld [vmem:[#allocation2 + $0x8] sm:$0xff]  ;;  %v1980_v34 = vld [vmem:[%s2303_s3 + $0xb8] sm:$0xff]  }
 0x205   :  { %1806 = vmatmul.mubr.msk.bf16.vlgmr.msra.gmra.mrb[8].mxu0 %vm129_vm1, %v586_v35  ;;  %v755_v45 = vpack.c.bf16 %v747_v40, %v746_v43  ;;  %v749_v47 = vld [vmem:[#allocation2 + $0x30] sm:$0xff]  ;;  %v748_v50 = vld [vmem:[#allocation2 + $0x28] sm:$0xff] }
 0x206   :  { %1810 = vmatpush3.bf16.msra.mxu0 %v1969_v62  ;;  %1813 = vmatprep.mubr.msk.bf16.mxu0 %vm129_vm1, %v673_v24  ;;  %v828_v48 = vld [vmem:[#allocation2 + $0xa] sm:$0xff]  ;;  %v829_v49 = vld [vmem:[#allocation2 + $0x12] sm:$0xff]  ;;  %v756_v51 = vpack.c.bf16 %v749_v47, %v748_v50  ;;  %v920_v62 = vpack.c.bf16 %v913_v61, %v579_v20 }
 0x207   :  { %1811 = vmatprep.subr.bf16.mxu0 %v1970_v37  ;;  %v837_v53 = vpack.c.bf16 %v829_v49, %v828_v48  ;;  %v830_v55 = vld [vmem:[#allocation2 + $0x2a] sm:$0xff]  ;;  %v831_v56 = vld [vmem:[#allocation2 + $0x32] sm:$0xff] }
 0x208   :  { %v838_v58 = vpack.c.bf16 %v831_v56, %v830_v55  ;;  %v1983_v40 = vld [vmem:[%s2303_s3 + $0xd0] sm:$0xff]   ;;  %v1349_v48 = vld [vmem:[#allocation2 + $0x18] sm:$0xff]  ;;  %v1986_v50 = vld [vmem:[%s2303_s3 + $0xe8] sm:$0xff]  }
 0x209   :  { %v1988_v55 = vld [vmem:[%s2305_s5 + $0x8] sm:$0xff]   ;;  %v1641_v56 = vld [vmem:[%s2304_s4 + $0x2] ss:$0 sm:$0xff] }
 0x20a   :  { %1812 = vmatpush3.bf16.msra.mxu0 %v1970_v37 }
 0x20b   :  { %1817 = vmatprep.subr.bf16.mxu0 %v1971_v38 }
 0x211   :  { %1814 = vmatmul.mubr.msk.bf16.vlgmr.msra.gmra.mrb[8].mxu0 %vm129_vm1, %v674_v42 }
 0x212   :  { %1818 = vmatpush3.bf16.msra.mxu0 %v1971_v38  ;;  %1821 = vmatprep.mubr.msk.bf16.mxu0 %vm129_vm1, %v755_v45  ;;  %v1982_v38 = vld [vmem:[%s2303_s3 + $0xc8] sm:$0xff]  }
 0x213   :  { %1819 = vmatprep.subr.bf16.mxu0 %v1972_v44 }
 0x216   :  { %1820 = vmatpush3.bf16.msra.mxu0 %v1972_v44  ;;  %v1984_v44 = vld [vmem:[%s2303_s3 + $0xd8] sm:$0xff]  }
 0x217   :  { %1825 = vmatprep.subr.bf16.mxu0 %v1973_v46 }
 0x21d   :  { %1822 = vmatmul.mubr.msk.bf16.vlgmr.msra.gmra.mrb[8].mxu0 %vm129_vm1, %v756_v51 }
 0x21e   :  { %1826 = vmatpush3.bf16.msra.mxu0 %v1973_v46  ;;  %1829 = vmatprep.mubr.msk.bf16.mxu0 %vm129_vm1, %v837_v53  ;;  %v1985_v46 = vld [vmem:[%s2303_s3 + $0xe0] sm:$0xff]  }
 0x21f   :  { %1827 = vmatprep.subr.bf16.mxu0 %v1974_v52 }
 0x222   :  { %1828 = vmatpush3.bf16.msra.mxu0 %v1974_v52  ;;  %v1351_v52 = vld [vmem:[#allocation2 + $0x38] sm:$0xff] }
 0x223   :  { %1833 = vmatprep.subr.bf16.mxu0 %v1975_v54 }
 0x229   :  { %1830 = vmatmul.mubr.msk.bf16.vlgmr.msra.gmra.mrb[8].mxu0 %vm129_vm1, %v838_v58 }
 0x22a   :  { %1834 = vmatpush3.bf16.msra.mxu0 %v1975_v54  ;;  %1837 = vmatprep.mubr.msk.bf16.mxu0 %vm129_vm1, %v919_v60  ;;  %v1987_v54 = vld [vmem:[%s2305_s5] sm:$0xff]  }
 0x22b   :  { %1835 = vmatprep.subr.bf16.mxu0 %v1976_v59 }
 0x22e   :  { %1836 = vmatpush3.bf16.msra.mxu0 %v1976_v59 }
 0x22f   :  { %1881 = vmatprep.subr.bf16.mxu0 %v1987_v54 }
 0x235   :  { %1838 = vmatmul.mubr.msk.bf16.vlgmr.msra.gmra.mrb[8].mxu0 %vm129_vm1, %v920_v62 }
 0x236   :  { %1882 = vmatpush3.bf16.msra.mxu0 %v1987_v54 }
 0x237   :  { %1883 = vmatprep.subr.bf16.mxu0 %v1988_v55 }
 0x23a   :  { %1884 = vmatpush3.bf16.msra.mxu0 %v1988_v55 }
 0x308   :  { %v1839_v3 = vpop.f32.mrb[8].mxu0 }
 0x309   :  { %v1897_v4 = vadd.f32 %v1839_v3, %v1599_v2  ;;  %v973_v5 = vpop.f32.mrb[9].mxu0 }
 0x30a   :  { %v1898_v6 = vadd.f32 %v1599_v2, %v973_v5  ;;  %v1840_v7 = vpop.f32.mrb[10].mxu0 }
 0x30b   :  { %vm994_vm6 = vcmp.gt.f32.partialorder %v1897_v4, 0.0  ;;  %v998_v8 = vmul.f32 0.2, %v1897_v4  ;;  %v1899_v9 = vadd.f32 %v1840_v7, %v1599_v2  ;;  %v976_v10 = vpop.f32.mrb[11].mxu0 }
 0x30c   :  { %vm992_vm7 = vcmp.gt.f32.partialorder %v1898_v6, 0.0  ;;  %v996_v11 = vmul.f32 0.2, %v1898_v6  ;;  %v1900_v12 = vadd.f32 %v1599_v2, %v976_v10 }
 0x30d   :  { %v1002_v13 = vsel %vm994_vm6, %v1897_v4, %v998_v8  ;;  %vm995_vm8 = vcmp.gt.f32.partialorder %v1899_v9, 0.0  ;;  %v999_v14 = vmul.f32 0.2, %v1899_v9 }
 0x30e   :  { %v2220_v15 = vadd.f32 %v1002_v13, %v2157_v23  ;;  %v1000_v16 = vsel %vm992_vm7, %v1898_v6, %v996_v11  ;;  %vm993_vm9 = vcmp.gt.f32.partialorder %v1900_v12, 0.0  ;;  %v997_v17 = vmul.f32 0.2, %v1900_v12 }
 0x30f   :  { %v2223_v19 = vadd.f32 %v1000_v16, %v2160_v27  ;;  %v1003_v21 = vsel %vm995_vm8, %v1899_v9, %v999_v14  ;;  %v1014_v27 = vld [vmem:[#allocation2] sm:$0xff] }
 0x310   :  { %1010 = vst.msk [vmem:[#allocation2 + $0x28] sm:$0xff] %vm129_vm1, %v2220_v15  ;;  %v2228_v25 = vadd.f32 %v1003_v21, %v2165_v29  ;;  %v1001_v26 = vsel %vm993_vm9, %v1900_v12, %v997_v17  ;;  %v1674_v16 = vld [vmem:[%s2306_s6] ss:$0 sm:$0xff] }
 0x311   :  { %1008 = vst.msk [vmem:[#allocation2 + $0x8] sm:$0xff] %vm129_vm1, %v2223_v19  ;;  %v2233_v23 = vadd.f32 %v1001_v26, %v2170_v18 }
 0x312   :  { %1011 = vst.msk [vmem:[#allocation2 + $0x30] sm:$0xff] %vm129_vm1, %v2228_v25 }
 0x313   :  { %1009 = vst.msk [vmem:[#allocation2 + $0x10] sm:$0xff] %vm129_vm1, %v2233_v23 }
 0x317   :  { %v1017_v30 = vld [vmem:[#allocation2 + $0x28] sm:$0xff] }
 0x318   :  { %v1015_v20 = vld [vmem:[#allocation2 + $0x8] sm:$0xff]  ;;  %v1024_v29 = vpack.c.bf16 %v1017_v30, %v1016_v28 }
 0x319   :  { %v1023_v31 = vpack.c.bf16 %v1015_v20, %v1014_v27  ;;  %v1102_v32 = vld [vmem:[#allocation2 + $0x4] sm:$0xff]  ;;  %v1105_v35 = vld [vmem:[#allocation2 + $0x2c] sm:$0xff]  ;;  %v1269_v47 = vld [vmem:[#allocation2 + $0x34] sm:$0xff] }
 0x31a   :  { %v1103_v33 = vld [vmem:[#allocation2 + $0xc] sm:$0xff]  ;;  %v1104_v37 = vld [vmem:[#allocation2 + $0x24] sm:$0xff]  ;;  %v1267_v42 = vld [vmem:[#allocation2 + $0x14] sm:$0xff]  ;;  %v1276_v49 = vpack.c.bf16 %v1269_v47, %v1105_v35 }
 0x31b   :  { %1845 = vmatprep.mubr.msk.bf16.mxu1 %vm129_vm1, %v1023_v31  ;;  %v1111_v18 = vpack.c.bf16 %v1103_v33, %v1102_v32  ;;  %v1185_v36 = vld [vmem:[#allocation2 + $0x10] sm:$0xff]  ;;  %v1112_v24 = vpack.c.bf16 %v1105_v35, %v1104_v37  ;;  %v1275_v45 = vpack.c.bf16 %v1267_v42, %v1103_v33 }
 0x31c   :  { %1846 = vmatmul.mubr.msk.bf16.vlgmr.msra.gmra.mrb[4].mxu1 %vm129_vm1, %v1024_v29  ;;  %v1193_v39 = vpack.c.bf16 %v1185_v36, %v1015_v20  ;;  %v1187_v41 = vld [vmem:[#allocation2 + $0x30] sm:$0xff]  ;;  %v1357_v51 = vpack.c.bf16 %v1349_v48, %v1185_v36 }
 0x31d   :  { %1850 = vmatpush3.bf16.msra.mxu1 %v1979_v1  ;;  %1853 = vmatprep.mubr.msk.bf16.mxu1 %vm129_vm1, %v1111_v18  ;;  %v1194_v43 = vpack.c.bf16 %v1187_v41, %v1017_v30  ;;  %v1358_v53 = vpack.c.bf16 %v1351_v52, %v1187_v41 }
 0x31e   :  { %1851 = vmatprep.subr.bf16.mxu1 %v1980_v34 }
 0x321   :  { %1852 = vmatpush3.bf16.msra.mxu1 %v1980_v34 }
 0x322   :  { %1857 = vmatprep.subr.bf16.mxu1 %v1981_v22 }
 0x328   :  { %1854 = vmatmul.mubr.msk.bf16.vlgmr.msra.gmra.mrb[4].mxu1 %vm129_vm1, %v1112_v24 }
 0x329   :  { %1858 = vmatpush3.bf16.msra.mxu1 %v1981_v22  ;;  %1861 = vmatprep.mubr.msk.bf16.mxu1 %vm129_vm1, %v1193_v39 }
 0x32a   :  { %1859 = vmatprep.subr.bf16.mxu1 %v1982_v38 }
 0x32d   :  { %1860 = vmatpush3.bf16.msra.mxu1 %v1982_v38 }
 0x32e   :  { %1865 = vmatprep.subr.bf16.mxu1 %v1983_v40 }
 0x334   :  { %1862 = vmatmul.mubr.msk.bf16.vlgmr.msra.gmra.mrb[4].mxu1 %vm129_vm1, %v1194_v43 }
 0x335   :  { %1866 = vmatpush3.bf16.msra.mxu1 %v1983_v40  ;;  %1869 = vmatprep.mubr.msk.bf16.mxu1 %vm129_vm1, %v1275_v45 }
 0x336   :  { %1867 = vmatprep.subr.bf16.mxu1 %v1984_v44 }
 0x339   :  { %1868 = vmatpush3.bf16.msra.mxu1 %v1984_v44 }
 0x33a   :  { %1873 = vmatprep.subr.bf16.mxu1 %v1985_v46 }
 0x340   :  { %1870 = vmatmul.mubr.msk.bf16.vlgmr.msra.gmra.mrb[4].mxu1 %vm129_vm1, %v1276_v49 }
 0x341   :  { %1874 = vmatpush3.bf16.msra.mxu1 %v1985_v46  ;;  %1877 = vmatprep.mubr.msk.bf16.mxu1 %vm129_vm1, %v1357_v51 }
 0x342   :  { %1875 = vmatprep.subr.bf16.mxu1 %v1986_v50 }
 0x345   :  { %1876 = vmatpush3.bf16.msra.mxu1 %v1986_v50 }
 0x34c   :  { %1878 = vmatmul.mubr.msk.bf16.vlgmr.msra.gmra.mrb[4].mxu1 %vm129_vm1, %v1358_v53 }
 0x41f   :  { %v1879_v57 = vpop.f32.mrb[4].mxu1 }
 0x420   :  { %v1901_v58 = vadd.f32 %v1879_v57, %v1641_v56  ;;  %v1411_v59 = vpop.f32.mrb[5].mxu1 }
 0x421   :  { %v1902_v60 = vadd.f32 %v1641_v56, %v1411_v59  ;;  %v1880_v61 = vpop.f32.mrb[6].mxu1 }
 0x422   :  { %vm1432_vm10 = vcmp.gt.f32.partialorder %v1901_v58, 0.0  ;;  %v1436_v62 = vmul.f32 0.2, %v1901_v58  ;;  %v1903_v63 = vadd.f32 %v1880_v61, %v1641_v56  ;;  %v1414_v0 = vpop.f32.mrb[7].mxu1 }
 0x423   :  { %vm1430_vm11 = vcmp.gt.f32.partialorder %v1902_v60, 0.0  ;;  %v1434_v1 = vmul.f32 0.2, %v1902_v60  ;;  %v1904_v2 = vadd.f32 %v1641_v56, %v1414_v0 }
 0x424   :  { %v1440_v3 = vsel %vm1432_vm10, %v1901_v58, %v1436_v62  ;;  %vm1433_vm12 = vcmp.gt.f32.partialorder %v1903_v63, 0.0  ;;  %v1437_v4 = vmul.f32 0.2, %v1903_v63 }
 0x425   :  { %v1438_v5 = vsel %vm1430_vm11, %v1902_v60, %v1434_v1  ;;  %vm1431_vm13 = vcmp.gt.f32.partialorder %v1904_v2, 0.0  ;;  %v1435_v6 = vmul.f32 0.2, %v1904_v2  ;;  %v1444_v8 = vadd.f32 %v1440_v3, %v2220_v15 }
 0x426   :  { %v1441_v7 = vsel %vm1433_vm12, %v1903_v63, %v1437_v4  ;;  %v1442_v11 = vadd.f32 %v1438_v5, %v2223_v19 }
 0x427   :  { %v1445_v9 = vadd.f32 %v1441_v7, %v2228_v25  ;;  %v1439_v10 = vsel %vm1431_vm13, %v1904_v2, %v1435_v6 }
 0x428   :  { %v1443_v12 = vadd.f32 %v1439_v10, %v2233_v23 }
 0x429   :  { %v1451_v13 = vpack.c.bf16 %v1445_v9, %v1444_v8 }
 0x42a   :  { %v1450_v14 = vpack.c.bf16 %v1443_v12, %v1442_v11 }
 0x42c   :  { %1885 = vmatprep.mubr.msk.bf16.mxu0 %vm129_vm1, %v1450_v14 }
 0x42d   :  { %1886 = vmatmul.mubr.msk.bf16.vlgmr.msra.gmra.mrb[12].mxu0 %vm129_vm1, %v1451_v13 }
 0x500   :  { %v1887_v17 = vpop.f32.mrb[12].mxu0 }
 0x501   :  { %v1520_v21 = vadd.f32 %v1887_v17, %v1674_v16  ;;  %v1511_v15 = vpop.f32.mrb[13].mxu0 }
 0x502   :  { %v1512_v25 = vadd.f32 %v1674_v16, %v1511_v15  ;;  %v1888_v26 = vpop.f32.mrb[14].mxu0 }
 0x503   :  { %1528 = vst [vmem:[#allocation3 + $0x10] sm:$0xff] %v1520_v21  ;;  %v1523_v19 = vadd.f32 %v1888_v26, %v1674_v16  ;;  %v1514_v23 = vpop.f32.mrb[15].mxu0 }
 0x504   :  { %1526 = vst [vmem:[#allocation3] sm:$0xff] %v1512_v25  ;;  %v1515_v27 = vadd.f32 %v1674_v16, %v1514_v23 }
 0x505   :  { %1529 = vst [vmem:[#allocation3 + $0x18] sm:$0xff] %v1523_v19 }
 0x506   :  { %1527 = vst [vmem:[#allocation3 + $0x8] sm:$0xff] %v1515_v27 }
 0x507   :  { %2000 = shalt.err (!%p1997_p4)
}
 0x508   :  { %s2001_s14 = scalar_lea.hbm %s2307_s7, 512 }
 0x509   :  { %p2002_p5 = scmp.ne.s32.totalorder %s2307_s7, %s2001_s14  ;;  %p2005_p6 = scmp.lt.u32.totalorder %s2001_s14, %s2307_s7 }
 0x50b   :  { %p2007_p7 = pnand %p2005_p6, %p2002_p5 }
 0x50d   :  { %2010 = shalt.err (!%p2007_p7)
}
 0x50e   :  { %s2015_s0 = smov 128   ;;  %s2016_s18 = smov 8  }
 0x50f   :  { %1541 = dma.vmem_to_hbm [thread:$0]  %s1536_s11, 512, %s2307_s7, [#allocation4], %s2015_s0, %s2015_s0, %s2016_s18  }
 0x510   :  { %2011 = dma.done.wait [#allocation4], 512  }
 0x511   :  { %2012 = vsyncadd [#allocation4], 4294966784 }
 0x512   :  { %1545 = vsyncpa [#allocation4], 1 }

</bundles_post_ra>
